<compile_context>
chip_gen: v6e
topology: v6e:2x2x1
jax: 0.10.0
libtpu: 0.0.40
codegen_flags: <defaults>
</compile_context>

<pallas_src>
import functools

import numpy as np
import jax
import jax.numpy as jnp
from jax.experimental import pallas as pl
from jax.experimental.pallas import tpu as pltpu


_LANE = 128
_SUBLANE = 8
# Minimum rows per grid step before it is worth splitting a single-step grid into
# two steps just so v7x's two TensorCores both get work (extra step ~0.35us on 1-TC chips).
_MEGACORE_MIN_ROWS = 256


def _round_up(a, m):
    return ((a + m - 1) // m) * m


# --------------------------------------------------------------------------- kernel
def policy_kernel(x_ref, w1_ref, b1_ref, w2_ref, b2_ref, o_ref):
    # fc1 on the MXU: bf16 operands, f32 accumulation.  x may arrive as f32 (no
    # wrapper pad/cast when input_dim is already a lane multiple); the cast below
    # is a no-op when the wrapper already produced bf16.
    x = x_ref[...].astype(jnp.bfloat16)
    h = jnp.dot(x, w1_ref[...], preferred_element_type=jnp.float32)
    # dropout (eval) -> identity; bias-add + ReLU in f32 on the VPU (v5e-safe).
    h = jnp.maximum(h + b1_ref[...], 0.0)
    # fc2: back to bf16 for the second MXU pass, accumulate in f32.
    y = jnp.dot(h.astype(jnp.bfloat16), w2_ref[...],
                preferred_element_type=jnp.float32)
    # dropout (eval) -> identity; bias-add + ReLU; lane-dense (128-multiple) store.
    o_ref[...] = jnp.maximum(y + b2_ref[...], 0.0).astype(o_ref.dtype)


# ------------------------------------------------------------------ parameter prep
def prepare_policy_params(w1, b1, w2, b2):
    """Pad feature dims to 128-lane multiples and cast weights to bf16 ONCE.

    w1: [input_dim, dim1], w2: [dim1, output_dim] (already transposed relative to
    PyTorch's [out, in] layout so the kernel computes x @ W + b).  Zero padding is
    exact for this network: padded x columns hit zero rows of w1, padded hidden
    columns have zero bias (ReLU(0)=0) and hit zero rows of w2.
    """
    input_dim, dim1 = w1.shape
    output_dim = w2.shape[1]
    k1p = _round_up(input_dim, _LANE)
    d1p = _round_up(dim1, _LANE)
    nop = _round_up(output_dim, _LANE)
    return {
        "w1": jnp.pad(w1, ((0, k1p - input_dim), (0, d1p - dim1))).astype(jnp.bfloat16),
        "b1": jnp.pad(b1.reshape(1, -1), ((0, 0), (0, d1p - dim1))).astype(jnp.float32),
        "w2": jnp.pad(w2, ((0, d1p - dim1), (0, nop - output_dim))).astype(jnp.bfloat16),
        "b2": jnp.pad(b2.reshape(1, -1), ((0, 0), (0, nop - output_dim))).astype(jnp.float32),
        "input_dim": int(input_dim),
        "output_dim": int(output_dim),
    }


# ------------------------------------------------------------------------- forward
def policy_network_forward(x, params, *, max_batch_tile=1024, out_dtype=jnp.float32):
    """x: [B, input_dim] f32 -> [B, output_dim] out_dtype (default f32)."""
    B, input_dim = x.shape
    assert input_dim == params["input_dim"]
    w1_p, b1_p, w2_p, b2_p = params["w1"], params["b1"], params["w2"], params["b2"]
    k1p, d1p = w1_p.shape
    nop = w2_p.shape[1]
    output_dim = params["output_dim"]
    out_itemsize = np.dtype(out_dtype).itemsize

    # ---- x: only touch it in the wrapper if the feature dim needs lane padding.
    if input_dim == k1p:
        x_in = x                       # f32 straight from HBM; cast to bf16 in-kernel
        x_itemsize = x.dtype.itemsize
    else:
        # One fused pad+cast pass; the kernel's bf16 cast is then a no-op.
        x_in = jnp.pad(x, ((0, 0), (0, k1p - input_dim))).astype(jnp.bfloat16)
        x_itemsize = 2

    # ---- batch tiling: cdiv grid with a partial last tile (no batch padding).
    # Balance tiles so a batch just above a tile boundary doesn't ~double the work,
    # and give v7x's two TensorCores >= 2 grid steps when there are enough rows.
    n_tiles = pl.cdiv(B, max_batch_tile)
    if n_tiles == 1 and B >= 2 * _MEGACORE_MIN_ROWS:
        n_tiles = 2
    if n_tiles == 1:
        tb = B                          # full-extent row block (OK even if B % 8 != 0)
    else:
        tb = _round_up(pl.cdiv(B, n_tiles), _SUBLANE)

    # ---- VMEM budget guard: resident bf16 weights + double-buffered x/out tiles.
    # v7x: 64 MiB physical / 32 MiB scoped default; v5e scoped default is 16 MiB.
    def vmem_est(tb_):
        resident = (k1p * d1p + d1p * nop) * 2 + (d1p + nop) * 4
        io = 2 * tb_ * (k1p * x_itemsize + nop * out_itemsize)   # double-buffered tiles
        return resident + io

    while vmem_est(tb) > (48 << 20) and tb > _SUBLANE:           # stay under v7x physical
        tb = _round_up(max(tb // 2, _SUBLANE), _SUBLANE)
    # TODO(synk): if the weights alone outgrow VMEM (input_dim/dim1 ~2K+), tile the
    # hidden dimension with an "arbitrary" reduction grid axis + f32 accumulator
    # scratch instead of keeping both weight matrices fully VMEM-resident.

    compiler_kwargs = dict(dimension_semantics=("parallel",))    # shard batch across TCs
    est = vmem_est(tb)
    if est > (12 << 20):   # above v5e's 16 MiB scoped-VMEM comfort zone -> be explicit
        compiler_kwargs["vmem_limit_bytes"] = min(int(est * 1.5) + (2 << 20), 100 << 20)

    grid = (pl.cdiv(B, tb),)

    cost = pl.CostEstimate(
        flops=2 * B * (k1p * d1p + d1p * nop),
        transcendentals=0,
        bytes_accessed=(B * k1p * x_itemsize + w1_p.size * 2 + w2_p.size * 2
                        + b1_p.size * 4 + b2_p.size * 4 + B * nop * out_itemsize),
    )

    out_padded = pl.pallas_call(
        policy_kernel,
        out_shape=jax.ShapeDtypeStruct((B, nop), out_dtype),
        grid=grid,
        in_specs=[
            pl.BlockSpec((tb, k1p), lambda i: (i, 0)),    # x row tile (partial last tile OK)
            pl.BlockSpec((k1p, d1p), lambda i: (0, 0)),   # w1 — VMEM-resident across steps
            pl.BlockSpec((1, d1p), lambda i: (0, 0)),     # b1 — VMEM-resident
            pl.BlockSpec((d1p, nop), lambda i: (0, 0)),   # w2 — VMEM-resident
            pl.BlockSpec((1, nop), lambda i: (0, 0)),     # b2 — VMEM-resident
        ],
        out_specs=pl.BlockSpec((tb, nop), lambda i: (i, 0)),
        compiler_params=pltpu.CompilerParams(**compiler_kwargs),
        cost_estimate=cost,
    )(x_in, w1_p, b1_p, w2_p, b2_p)

    # Row tiling never over-writes (edge blocks are masked); only slice the feature pad.
    return out_padded[:, :output_dim]


# ----------------------------------------------------------------------------- init
def xavier_uniform(key, fan_in, fan_out):
    # torch.nn.init.xavier_uniform_ (gain=1): U(-a, a), a = sqrt(6/(fan_in+fan_out)).
    # PyTorch weight is [fan_out, fan_in]; we store it transposed as [fan_in, fan_out].
    bound = (6.0 / (fan_in + fan_out)) ** 0.5
    return jax.random.uniform(key, (fan_in, fan_out), dtype=jnp.float32,
                              minval=-bound, maxval=bound)


if __name__ == "__main__":
    # Small shapes consistent with the module: Linear(input_dim, dim1), Linear(dim1, output_dim)
    batch, input_dim, dim1, output_dim = 16, 16, 32, 8

    key = jax.random.PRNGKey(0)
    kx, k1, k2, kx2 = jax.random.split(key, 4)

    x = jax.random.normal(kx, (batch, input_dim), dtype=jnp.float32)
    w1 = xavier_uniform(k1, input_dim, dim1)
    b1 = jnp.zeros((dim1,), dtype=jnp.float32)
    w2 = xavier_uniform(k2, dim1, output_dim)
    b2 = jnp.zeros((output_dim,), dtype=jnp.float32)

    # Pad/cast weights ONCE at init time; the jitted forward keeps them as constants.
    params = prepare_policy_params(w1, b1, w2, b2)
    fwd = jax.jit(functools.partial(policy_network_forward, params=params))

    out = jax.block_until_ready(fwd(x))

    # Pure-JAX f32 reference (eval-mode dropout == identity); bf16 MXU tolerance.
    ref = jnp.maximum(jnp.maximum(x @ w1 + b1, 0.0) @ w2 + b2, 0.0)
    assert out.shape == (batch, output_dim)
    assert jnp.allclose(out, ref, atol=2e-2, rtol=2e-2), float(jnp.max(jnp.abs(out - ref)))

    # Exercise the partial-last-row-tile (masked edge block) path: B=20 with 8-row tiles.
    x2 = jax.random.normal(kx2, (20, input_dim), dtype=jnp.float32)
    out2 = jax.block_until_ready(policy_network_forward(x2, params, max_batch_tile=8))
    ref2 = jnp.maximum(jnp.maximum(x2 @ w1 + b1, 0.0) @ w2 + b2, 0.0)
    assert out2.shape == (20, output_dim)
    assert jnp.allclose(out2, ref2, atol=2e-2, rtol=2e-2), float(jnp.max(jnp.abs(out2 - ref2)))

    print("KERNEL_OK")
</pallas_src>

<mosaic_0001>
module attributes {stable_mosaic.version = 11 : i64} {
  func.func @policy_kernel(%arg0: i32, %arg1: memref<16x128xbf16, #tpu.memory_space<vmem>>, %arg2: memref<128x128xbf16, #tpu.memory_space<vmem>>, %arg3: memref<1x128xf32, #tpu.memory_space<vmem>>, %arg4: memref<128x128xbf16, #tpu.memory_space<vmem>>, %arg5: memref<1x128xf32, #tpu.memory_space<vmem>>, %arg6: memref<16x128xf32, #tpu.memory_space<vmem>>) attributes {dimension_semantics = [#tpu.dimension_semantics<parallel>], iteration_bounds = array<i64: 1>, scalar_prefetch = 0 : i64, scratch_operands = 0 : i64, tpu.core_type = #tpu.core_type<tc>, window_params = [{transform_indices = @transform_0, window_bounds = array<i64: 16, 128>}, {pipeline_mode = #tpu.pipeline_mode<synchronous>, transform_indices = @transform_1, window_bounds = array<i64: 128, 128>}, {pipeline_mode = #tpu.pipeline_mode<synchronous>, transform_indices = @transform_2, window_bounds = array<i64: 1, 128>}, {pipeline_mode = #tpu.pipeline_mode<synchronous>, transform_indices = @transform_3, window_bounds = array<i64: 128, 128>}, {pipeline_mode = #tpu.pipeline_mode<synchronous>, transform_indices = @transform_4, window_bounds = array<i64: 1, 128>}, {transform_indices = @transform_5, window_bounds = array<i64: 16, 128>}]} {
    %c0 = arith.constant 0 : index
    %c0_0 = arith.constant 0 : index
    %0 = vector.load %arg1[%c0, %c0_0] : memref<16x128xbf16, #tpu.memory_space<vmem>>, vector<16x128xbf16>
    %c0_1 = arith.constant 0 : index
    %c0_2 = arith.constant 0 : index
    %1 = vector.load %arg2[%c0_1, %c0_2] : memref<128x128xbf16, #tpu.memory_space<vmem>>, vector<128x128xbf16>
    %cst = arith.constant dense<0.000000e+00> : vector<16x128xf32>
    %2 = tpu.matmul %0, %1, %cst {dimension_numbers = #tpu.dot_dimension_numbers<[1], [0], [0], [1], [0, 0, 1, 1], [], []>} : vector<16x128xbf16>, vector<128x128xbf16>, vector<16x128xf32> -> vector<16x128xf32>
    %c0_3 = arith.constant 0 : index
    %c0_4 = arith.constant 0 : index
    %3 = vector.load %arg3[%c0_3, %c0_4] : memref<1x128xf32, #tpu.memory_space<vmem>>, vector<1x128xf32>
    %4 = vector.broadcast %3 : vector<1x128xf32> to vector<16x128xf32>
    %5 = arith.addf %2, %4 : vector<16x128xf32>
    %cst_5 = arith.constant 0.000000e+00 : f32
    %6 = vector.broadcast %cst_5 : f32 to vector<16x128xf32>
    %7 = arith.maximumf %5, %6 : vector<16x128xf32>
    %8 = arith.truncf %7 : vector<16x128xf32> to vector<16x128xbf16>
    %c0_6 = arith.constant 0 : index
    %c0_7 = arith.constant 0 : index
    %9 = vector.load %arg4[%c0_6, %c0_7] : memref<128x128xbf16, #tpu.memory_space<vmem>>, vector<128x128xbf16>
    %cst_8 = arith.constant dense<0.000000e+00> : vector<16x128xf32>
    %10 = tpu.matmul %8, %9, %cst_8 {dimension_numbers = #tpu.dot_dimension_numbers<[1], [0], [0], [1], [0, 0, 1, 1], [], []>} : vector<16x128xbf16>, vector<128x128xbf16>, vector<16x128xf32> -> vector<16x128xf32>
    %c0_9 = arith.constant 0 : index
    %c0_10 = arith.constant 0 : index
    %11 = vector.load %arg5[%c0_9, %c0_10] : memref<1x128xf32, #tpu.memory_space<vmem>>, vector<1x128xf32>
    %12 = vector.broadcast %11 : vector<1x128xf32> to vector<16x128xf32>
    %13 = arith.addf %10, %12 : vector<16x128xf32>
    %cst_11 = arith.constant 0.000000e+00 : f32
    %14 = vector.broadcast %cst_11 : f32 to vector<16x128xf32>
    %15 = arith.maximumf %13, %14 : vector<16x128xf32>
    %c0_12 = arith.constant 0 : index
    %c0_13 = arith.constant 0 : index
    %16 = vector.load %arg6[%c0_12, %c0_13] : memref<16x128xf32, #tpu.memory_space<vmem>>, vector<16x128xf32>
    tpu.vector_store %arg6[%c0_12, %c0_13], %15 {strides = array<i32>} : memref<16x128xf32, #tpu.memory_space<vmem>>, vector<16x128xf32>,
    return
  }
  func.func @transform_0(%arg0: i32) -> (i32, i32) {
    %c0_i32 = arith.constant 0 : i32
    %c0_i32_0 = arith.constant 0 : i32
    return %arg0, %c0_i32 : i32, i32
  }
  func.func @transform_1(%arg0: i32) -> (i32, i32) {
    %c0_i32 = arith.constant 0 : i32
    %c0_i32_0 = arith.constant 0 : i32
    %c0_i32_1 = arith.constant 0 : i32
    return %c0_i32, %c0_i32_0 : i32, i32
  }
  func.func @transform_2(%arg0: i32) -> (i32, i32) {
    %c0_i32 = arith.constant 0 : i32
    %c0_i32_0 = arith.constant 0 : i32
    %c0_i32_1 = arith.constant 0 : i32
    return %c0_i32, %c0_i32_0 : i32, i32
  }
  func.func @transform_3(%arg0: i32) -> (i32, i32) {
    %c0_i32 = arith.constant 0 : i32
    %c0_i32_0 = arith.constant 0 : i32
    %c0_i32_1 = arith.constant 0 : i32
    return %c0_i32, %c0_i32_0 : i32, i32
  }
  func.func @transform_4(%arg0: i32) -> (i32, i32) {
    %c0_i32 = arith.constant 0 : i32
    %c0_i32_0 = arith.constant 0 : i32
    %c0_i32_1 = arith.constant 0 : i32
    return %c0_i32, %c0_i32_0 : i32, i32
  }
  func.func @transform_5(%arg0: i32) -> (i32, i32) {
    %c0_i32 = arith.constant 0 : i32
    %c0_i32_0 = arith.constant 0 : i32
    return %arg0, %c0_i32 : i32, i32
  }
}

</mosaic_0001>

<bundles_post_ra>
// kernel: policy_network_forward.1
= control target key start
LH: loop header
LB: loop body
LE: loop exit
PB: predicated region body
PF: predicated region fallthrough
CT: control target
= control target key end

     0   :  { %10 = vsyncpa [#allocation3], 0  ;;  %s495_s0 = inlined_call_operand.vmem [shape: bf16[16,128], index: 0, kind: input, shape index: {}]   ;;  %s496_s1 = inlined_call_operand.hbm [shape: bf16[128,128], index: 1, kind: input, shape index: {}]   ;;  %s497_s2 = inlined_call_operand.vmem [shape: f32[1,128], index: 2, kind: input, shape index: {}, may-alias: {2,4}]   ;;  %s498_s3 = inlined_call_operand.hbm [shape: bf16[128,128], index: 3, kind: input, shape index: {}]   ;;  %s499_s4 = inlined_call_operand.vmem [shape: f32[1,128], index: 4, kind: input, shape index: {}, may-alias: {2,4}]   ;;  %s500_s5 = inlined_call_operand.vmem [shape: f32[16,128], index: 5, kind: output, shape index: {}]  }
   0x1   :  { %11 = vsyncpa [#allocation5], 0  ;;  %s438_s18 = smov [#allocation2]  }
   0x2   :  { %s19_s19 = sshll.u32 %s438_s18, 4  ;;  %s20_s19 = int_to_ptr.vmem [resolvable:$true] %s19_s19 }
   0x3   :  { %s402_s20 = scalar_lea.vmem %s20_s19, 1024  ;;  %p407_p1 = scmp.lt.s32.totalorder %s20_s19, %s20_s19 }
   0x4   :  { %p403_p0 = scmp.ne.s32.totalorder %s20_s19, %s402_s20  ;;  %p408_p2 = scmp.lt.s32.totalorder %s402_s20, %s402_s20 }
   0x6   :  { %p409_p3 = por %p408_p2, %p407_p1 }
   0x8   :  { %p410_p4 = pnand %p409_p3, %p403_p0 }
   0xa   :  { %413 = shalt.err (!%p410_p4)
}
   0xb   :  { %s439_s21 = smov 64   ;;  %s440_s22 = smov 4  }
   0xc   :  { %25 = dma.hbm_to_vmem [thread:$0]  %s496_s1, 1024, %s20_s19, [#allocation3], %s439_s21, %s439_s21, %s440_s22  }
   0xd   :  { %s441_s25 = smov [#allocation4]  }
   0xe   :  { %s33_s26 = sshll.u32 %s441_s25, 4  ;;  %s34_s26 = int_to_ptr.vmem [resolvable:$true] %s33_s26 }
   0xf   :  { %s422_s27 = scalar_lea.vmem %s34_s26, 1024  ;;  %p427_p6 = scmp.lt.s32.totalorder %s34_s26, %s34_s26 }
  0x10   :  { %p423_p5 = scmp.ne.s32.totalorder %s34_s26, %s422_s27  ;;  %p428_p7 = scmp.lt.s32.totalorder %s422_s27, %s422_s27 }
  0x12   :  { %p429_p8 = por %p428_p7, %p427_p6 }
  0x14   :  { %p430_p9 = pnand %p429_p8, %p423_p5 }
  0x16   :  { %433 = shalt.err (!%p430_p9)
}
  0x17   :  { %39 = dma.hbm_to_vmem [thread:$0]  %s498_s3, 1024, %s34_s26, [#allocation5], %s439_s21, %s439_s21, %s440_s22  }
  0x18   :  { %434 = dma.done.wait [#allocation3], 1024  }
  0x19   :  { %435 = vsyncadd [#allocation3], 4294966272 }
  0x1a   :  { %436 = dma.done.wait [#allocation5], 1024  }
  0x1b   :  { %437 = vsyncadd [#allocation5], 4294966272  ;;  %v442_v0 = vmov 0.0   ;;  %vm443_vm0 = vmmov 0   ;;  %v377_v1 = vld [vmem:[#allocation2 + $0x38] sm:$0xff]   ;;  %v378_v2 = vld [vmem:[#allocation2 + $0x30] sm:$0xff]  }
  0x1c   :  { %331 = vmatprep.subr.bf16.mxu0 %v442_v0  ;;  %347 = vmatprep.mubr.msk.bf16.mxu0 %vm443_vm0, %v442_v0  ;;  %v379_v3 = vld [vmem:[#allocation2 + $0x28] sm:$0xff]   ;;  %v386_v4 = vld [vmem:[#allocation4 + $0x38] sm:$0xff]   ;;  %v380_v5 = vld [vmem:[#allocation2 + $0x20] sm:$0xff]  }
  0x1d   :  { %351 = vmatprep.subr.bf16.mxu1 %v442_v0  ;;  %367 = vmatprep.mubr.msk.bf16.mxu1 %vm443_vm0, %v442_v0  ;;  %v387_v6 = vld [vmem:[#allocation4 + $0x30] sm:$0xff]   ;;  %v381_v7 = vld [vmem:[#allocation2 + $0x18] sm:$0xff]   ;;  %v388_v8 = vld [vmem:[#allocation4 + $0x28] sm:$0xff]  }
  0x1e   :  { %332 = vmatpush3.bf16.msra.mxu0 %v377_v1  ;;  %352 = vmatpush3.bf16.msra.mxu1 %v386_v4  ;;  %v382_v9 = vld [vmem:[#allocation2 + $0x10] sm:$0xff]   ;;  %v389_v10 = vld [vmem:[#allocation4 + $0x20] sm:$0xff]   ;;  %v383_v11 = vld [vmem:[#allocation2 + $0x8] sm:$0xff]  }
  0x1f   :  { %333 = vmatprep.subr.bf16.mxu0 %v442_v0  ;;  %353 = vmatprep.subr.bf16.mxu1 %v442_v0  ;;  %v390_v12 = vld [vmem:[#allocation4 + $0x18] sm:$0xff]   ;;  %v384_v13 = vld [vmem:[#allocation2] sm:$0xff]   ;;  %v391_v15 = vld [vmem:[#allocation4 + $0x10] sm:$0xff]  }
  0x20   :  { %v385_v14 = vld [vmem:[%s495_s0] sm:$0xff]   ;;  %v392_v16 = vld [vmem:[#allocation4 + $0x8] sm:$0xff]  }
  0x21   :  { %v393_v17 = vld [vmem:[#allocation4] sm:$0xff]  }
  0x22   :  { %334 = vmatpush3.bf16.msra.mxu0 %v378_v2  ;;  %354 = vmatpush3.bf16.msra.mxu1 %v387_v6  ;;  %v294_v18 = vld [vmem:[%s497_s2] ss:$0 sm:$0xff] }
  0x23   :  { %335 = vmatprep.subr.bf16.mxu0 %v442_v0  ;;  %355 = vmatprep.subr.bf16.mxu1 %v442_v0  ;;  %v304_v28 = vld [vmem:[%s499_s4] ss:$0 sm:$0xff] }
  0x26   :  { %336 = vmatpush3.bf16.msra.mxu0 %v379_v3  ;;  %356 = vmatpush3.bf16.msra.mxu1 %v388_v8 }
  0x27   :  { %337 = vmatprep.subr.bf16.mxu0 %v442_v0  ;;  %357 = vmatprep.subr.bf16.mxu1 %v442_v0 }
  0x2a   :  { %338 = vmatpush3.bf16.msra.mxu0 %v380_v5  ;;  %358 = vmatpush3.bf16.msra.mxu1 %v389_v10 }
  0x2b   :  { %339 = vmatprep.subr.bf16.mxu0 %v442_v0  ;;  %359 = vmatprep.subr.bf16.mxu1 %v442_v0 }
  0x2e   :  { %340 = vmatpush3.bf16.msra.mxu0 %v381_v7  ;;  %360 = vmatpush3.bf16.msra.mxu1 %v390_v12 }
  0x2f   :  { %341 = vmatprep.subr.bf16.mxu0 %v442_v0  ;;  %361 = vmatprep.subr.bf16.mxu1 %v442_v0 }
  0x32   :  { %342 = vmatpush3.bf16.msra.mxu0 %v382_v9  ;;  %362 = vmatpush3.bf16.msra.mxu1 %v391_v15 }
  0x33   :  { %343 = vmatprep.subr.bf16.mxu0 %v442_v0  ;;  %363 = vmatprep.subr.bf16.mxu1 %v442_v0 }
  0x36   :  { %344 = vmatpush3.bf16.msra.mxu0 %v383_v11  ;;  %364 = vmatpush3.bf16.msra.mxu1 %v392_v16 }
  0x37   :  { %345 = vmatprep.subr.bf16.mxu0 %v442_v0  ;;  %365 = vmatprep.subr.bf16.mxu1 %v442_v0 }
  0x3a   :  { %346 = vmatpush3.bf16.msra.mxu0 %v384_v13  ;;  %366 = vmatpush3.bf16.msra.mxu1 %v393_v17 }
  0x3d   :  { %348 = vmatmul.mubr.bf16.vlgmr.msra.gmra.mxu0 %v385_v14 }
  0xfd   :  { %v162_v19 = vpop.f32.mrf.mxu0 }
  0xfe   :  { %v163_v21 = vadd.f32 %v294_v18, %v162_v19 }
  0xff   :  { %v349_v20 = vpop.f32.mrf.mxu0 }
 0x100   :  { %v169_v25 = vmax.f32 %v163_v21, 0.0 }
 0x101   :  { %v165_v22 = vpop.f32.mrf.mxu0 }
 0x102   :  { %v166_v23 = vadd.f32 %v294_v18, %v165_v22 }
 0x103   :  { %v350_v24 = vpop.f32.mrf.mxu0 }
 0x104   :  { %v170_v26 = vmax.f32 %v166_v23, 0.0 }
 0x106   :  { %v171_v27 = vpack.c.bf16 %v170_v26, %v169_v25 }
 0x108   :  { %368 = vmatmul.mubr.bf16.vlgmr.msra.gmra.mxu1 %v171_v27 }
 0x1c8   :  { %v277_v29 = vpop.f32.mrf.mxu1 }
 0x1c9   :  { %v278_v30 = vadd.f32 %v304_v28, %v277_v29 }
 0x1ca   :  { %v369_v31 = vpop.f32.mrf.mxu1 }
 0x1cb   :  { %v284_v32 = vmax.f32 %v278_v30, 0.0 }
 0x1cc   :  { %v280_v33 = vpop.f32.mrf.mxu1 }
 0x1cd   :  { %286 = vst [vmem:[%s500_s5] sm:$0xff] %v284_v32  ;;  %v281_v34 = vadd.f32 %v304_v28, %v280_v33 }
 0x1ce   :  { %v370_v35 = vpop.f32.mrf.mxu1 }
 0x1cf   :  { %v285_v36 = vmax.f32 %v281_v34, 0.0 }
 0x1d1   :  { %287 = vst [vmem:[%s500_s5 + $0x8] sm:$0xff] %v285_v36 }
 0x1d2   :  { %292 = vsyncpa [#allocation3], 1 }
 0x1d3   :  { %293 = vsyncpa [#allocation5], 1 }

</bundles_post_ra>
